<compile_context>
chip_gen: v5e
topology: v5e:2x2
jax: 0.10.0
libtpu: 0.0.40
codegen_flags: <defaults>
</compile_context>

<pallas_src>
import functools

import jax
import jax.numpy as jnp
from jax import lax
from jax.experimental import pallas as pl
from jax.experimental.pallas import tpu as pltpu


# ---------------------------------------------------------------------------
# Kernel helpers
# ---------------------------------------------------------------------------
def _lane_group_sum(v, f_sub):
    """Combine lane groups of width `f_sub` (result replicated across groups).

    v: (bt, 1, lanes) partial sums. When node rows were folded into the lane
    axis the lanes hold k = lanes // f_sub groups of f_sub features; they are
    combined with log2(k) circular lane rolls (XLU slot -> ~free next to the
    VPU work). When f_sub >= lanes this is a no-op.
    """
    lanes = v.shape[-1]
    off = f_sub
    while off < lanes:
        v = v + pltpu.roll(v, shift=off, axis=2)
        off *= 2
    return v


# ---------------------------------------------------------------------------
# Kernels
# ---------------------------------------------------------------------------
def _graphnorm_fused_kernel(x_ref, p_ref, o_ref, *, f_sub, n_total):
    """Full node axis resident in VMEM: centered two-pass mean/var + FMA."""
    x = x_ref[...].astype(jnp.float32)                 # (bt, rows, lanes)
    p = p_ref[...].astype(jnp.float32)                 # (3, lanes)
    gamma = p[0:1].reshape(1, 1, -1)
    beta = p[1:2].reshape(1, 1, -1)
    alpha = p[2:3].reshape(1, 1, -1)

    inv_n = jnp.float32(1.0 / n_total)
    mean = _lane_group_sum(jnp.sum(x, axis=1, keepdims=True), f_sub) * inv_n
    d = x - mean                                       # centered pass
    var = _lane_group_sum(jnp.sum(d * d, axis=1, keepdims=True), f_sub) * inv_n
    # TODO(synk): no eps before rsqrt -- matches the PyTorch module exactly
    # (constant feature columns give inf/nan, same as torch).
    inv_std = lax.rsqrt(jnp.maximum(var, 0.0))

    # gamma*(x - alpha*mean)/std + beta  ==  d*scale + bias
    scale = gamma * inv_std
    bias = beta + scale * (mean * (1.0 - alpha))
    o_ref[...] = (d * scale + bias).astype(o_ref.dtype)


def _graphnorm_stats_kernel(x_ref, p_ref, scale_ref, bias_ref, s1_ref, s2_ref,
                            *, f_sub, n_total):
    """Streamed (large-N) pass 1: accumulate sum / sum-sq, emit scale & bias."""
    n = pl.program_id(2)

    @pl.when(n == 0)
    def _():
        s1_ref[...] = jnp.zeros_like(s1_ref)
        s2_ref[...] = jnp.zeros_like(s2_ref)

    x = x_ref[...]
    s1_ref[...] += jnp.sum(x, axis=1, keepdims=True, dtype=jnp.float32)
    xf = x.astype(jnp.float32)
    s2_ref[...] += jnp.sum(xf * xf, axis=1, keepdims=True)

    @pl.when(n == pl.num_programs(2) - 1)
    def _():
        inv_n = jnp.float32(1.0 / n_total)
        mean = _lane_group_sum(s1_ref[...], f_sub) * inv_n
        mean_sq = _lane_group_sum(s2_ref[...], f_sub) * inv_n
        # TODO(synk): streamed path uses E[x^2]-mean^2 (clamped >= 0); a fully
        # centered variance would require a third sweep over x from HBM.
        var = jnp.maximum(mean_sq - mean * mean, 0.0)
        inv_std = lax.rsqrt(var)
        p = p_ref[...].astype(jnp.float32)
        gamma = p[0:1].reshape(1, 1, -1)
        beta = p[1:2].reshape(1, 1, -1)
        alpha = p[2:3].reshape(1, 1, -1)
        scale = gamma * inv_std
        scale_ref[...] = scale
        bias_ref[...] = beta - scale * (alpha * mean)


def _graphnorm_apply_kernel(x_ref, scale_ref, bias_ref, o_ref):
    """Streamed pass 2: out = x * scale + bias."""
    x = x_ref[...].astype(jnp.float32)
    o_ref[...] = (x * scale_ref[...] + bias_ref[...]).astype(o_ref.dtype)


# ---------------------------------------------------------------------------
# Tiling / VMEM policy
# ---------------------------------------------------------------------------
def _vmem_budget():
    """(block_cap_bytes, vmem_limit_bytes) per TPU generation."""
    try:
        cap = getattr(pltpu.get_tpu_info(), "vmem_capacity_bytes", None)
    except Exception:
        cap = None
    if cap is not None and cap >= 96 * 1024 * 1024:    # v5e / v6e: 128 MiB VMEM
        return 8 * 1024 * 1024, 64 * 1024 * 1024
    # v7x (64 MiB per TensorCore) or unknown generation: stay conservative.
    return 4 * 1024 * 1024, 44 * 1024 * 1024


def _pick_tn(n, max_rows):
    """Largest multiple-of-8 divisor of n that is <= max_rows (None if none)."""
    best = None
    i = 1
    while i * i <= n:
        if n % i == 0:
            for d in (i, n // i):
                if d <= max_rows and d % 8 == 0 and (best is None or d > best):
                    best = d
        i += 1
    return best


def _choose_tiles(batch, n_eff, f_eff, itemsize, block_cap):
    """Returns (fused, bt, tf, tn)."""
    if f_eff % 128 == 0:
        # Prefer growing the lane (feature) tile up to 512 before batch packing.
        tf_candidates = [c for c in (512, 384, 256, 128) if f_eff % c == 0]
    else:
        # TODO(synk): F not a multiple of 128 (and not foldable) falls back to a
        # full-width feature block -> masked narrow-lane stores.
        tf_candidates = [f_eff]

    # Fused path: full node axis resident; widest lane tile that fits the cap.
    for tf in tf_candidates:
        if n_eff * tf * itemsize <= block_cap:
            bt = 1
            while batch % (2 * bt) == 0 and 2 * bt * n_eff * tf * itemsize <= block_cap:
                bt *= 2
            # Keep >= 2 parallel grid steps so both v7x TensorCores get work.
            while bt > 1 and (f_eff // tf) * (batch // bt) < 2:
                bt //= 2
            return True, bt, tf, n_eff

    # Streamed (N-tiled) path for large graphs.
    tf = tf_candidates[-1]
    max_rows = max(block_cap // (tf * itemsize), 8)
    tn = _pick_tn(n_eff, max_rows)
    if tn is None:
        # TODO(synk): no multiple-of-8 divisor of N fits the cap; fall back to a
        # single oversized resident block rather than an invalid tiling.
        return True, 1, tf, n_eff
    return False, 1, tf, tn


# ---------------------------------------------------------------------------
# Wrapper
# ---------------------------------------------------------------------------
def graph_norm(x, gamma, beta, alpha, *, block_cap_bytes=None):
    """x: (B, N, F); gamma/beta/alpha: (F,). Returns (B, N, F)."""
    B, N, F = x.shape
    block_cap, vmem_limit = _vmem_budget()
    if block_cap_bytes is not None:
        block_cap = block_cap_bytes

    params = jnp.stack([gamma, beta, alpha], axis=0)   # (3, F): one DMA, 3 rows

    # Small-F lane folding: pack k node rows per lane row so every store is
    # lane-dense (128 lanes) instead of masked narrow stores.
    f_sub, n_eff, f_eff, x_eff = F, N, F, x
    if F < 128 and 128 % F == 0 and N % (128 // F) == 0:
        k = 128 // F
        x_eff = x.reshape(B, N // k, k * F)            # free row-major view
        params = jnp.tile(params, (1, k))              # lane j needs param[j % F]
        n_eff, f_eff = N // k, k * F

    fused, bt, tf, tn = _choose_tiles(B, n_eff, f_eff, x.dtype.itemsize, block_cap)

    if fused:
        out_eff = pl.pallas_call(
            functools.partial(_graphnorm_fused_kernel, f_sub=f_sub, n_total=N),
            out_shape=jax.ShapeDtypeStruct((B, n_eff, f_eff), x.dtype),
            grid_spec=pl.GridSpec(
                grid=(f_eff // tf, B // bt),           # F outer: params stay resident
                in_specs=[pl.BlockSpec((bt, n_eff, tf), lambda f, b: (b, 0, f)),
                          pl.BlockSpec((3, tf), lambda f, b: (0, f))],
                out_specs=pl.BlockSpec((bt, n_eff, tf), lambda f, b: (b, 0, f)),
            ),
            compiler_params=pltpu.CompilerParams(
                dimension_semantics=("parallel", "parallel"),
                vmem_limit_bytes=vmem_limit,
            ),
        )(x_eff, params)
    else:
        # Pass 1: per-(batch, feature) scale/bias via streamed N reduction.
        scale, bias = pl.pallas_call(
            functools.partial(_graphnorm_stats_kernel, f_sub=f_sub, n_total=N),
            out_shape=(jax.ShapeDtypeStruct((B, 1, f_eff), jnp.float32),
                       jax.ShapeDtypeStruct((B, 1, f_eff), jnp.float32)),
            grid_spec=pltpu.PrefetchScalarGridSpec(
                num_scalar_prefetch=0,
                grid=(f_eff // tf, B, n_eff // tn),
                in_specs=[pl.BlockSpec((1, tn, tf), lambda f, b, n: (b, n, f)),
                          pl.BlockSpec((3, tf), lambda f, b, n: (0, f))],
                out_specs=(pl.BlockSpec((1, 1, tf), lambda f, b, n: (b, 0, f)),
                           pl.BlockSpec((1, 1, tf), lambda f, b, n: (b, 0, f))),
                scratch_shapes=[pltpu.VMEM((1, 1, tf), jnp.float32),
                                pltpu.VMEM((1, 1, tf), jnp.float32)],
            ),
            compiler_params=pltpu.CompilerParams(
                dimension_semantics=("parallel", "parallel", "arbitrary"),
                vmem_limit_bytes=vmem_limit,
            ),
        )(x_eff, params)

        # Pass 2: elementwise FMA.
        out_eff = pl.pallas_call(
            _graphnorm_apply_kernel,
            out_shape=jax.ShapeDtypeStruct((B, n_eff, f_eff), x.dtype),
            grid_spec=pl.GridSpec(
                grid=(f_eff // tf, B, n_eff // tn),
                in_specs=[pl.BlockSpec((1, tn, tf), lambda f, b, n: (b, n, f)),
                          pl.BlockSpec((1, 1, tf), lambda f, b, n: (b, 0, f)),
                          pl.BlockSpec((1, 1, tf), lambda f, b, n: (b, 0, f))],
                out_specs=pl.BlockSpec((1, tn, tf), lambda f, b, n: (b, n, f)),
            ),
            compiler_params=pltpu.CompilerParams(
                dimension_semantics=("parallel", "parallel", "parallel"),
                vmem_limit_bytes=vmem_limit,
            ),
        )(x_eff, scale, bias)

    if (n_eff, f_eff) != (N, F):
        out_eff = out_eff.reshape(B, N, F)
    return out_eff


def graph_norm_ref(x, gamma, beta, alpha):
    # Pure-JAX reference mirroring the PyTorch forward (unbiased=False).
    mean = jnp.mean(x, axis=-2, keepdims=True)
    std = jnp.sqrt(jnp.mean((x - mean) ** 2, axis=-2, keepdims=True))
    return gamma * ((x - alpha * mean) / std) + beta


if __name__ == "__main__":
    key = jax.random.PRNGKey(0)
    k1, k2, k3, k4, k5 = jax.random.split(key, 5)

    # 1) Module-shaped test (fused + small-F lane-folding path).
    B, N, F = 2, 16, 32  # batch, nodes, feature_size
    x = jax.random.normal(k1, (B, N, F), dtype=jnp.float32)
    # reset_parameters(): gamma=ones, beta=zeros, alpha=ones (deterministic)
    gamma = jnp.ones((F,), dtype=jnp.float32)
    beta = jnp.zeros((F,), dtype=jnp.float32)
    alpha = jnp.ones((F,), dtype=jnp.float32)

    out = jax.block_until_ready(graph_norm(x, gamma, beta, alpha))
    ref = graph_norm_ref(x, gamma, beta, alpha)
    assert out.shape == (B, N, F)
    assert jnp.allclose(out, ref, atol=1e-5, rtol=1e-5), "mismatch (fused path)"

    # 2) Streamed (N-tiled) path, forced with a tiny block cap, random params.
    B2, N2, F2 = 2, 64, 256
    x2 = jax.random.normal(k2, (B2, N2, F2), dtype=jnp.float32)
    g2 = 1.0 + 0.1 * jax.random.normal(k3, (F2,), dtype=jnp.float32)
    b2 = 0.1 * jax.random.normal(k4, (F2,), dtype=jnp.float32)
    a2 = 1.0 + 0.1 * jax.random.normal(k5, (F2,), dtype=jnp.float32)

    out2 = jax.block_until_ready(
        graph_norm(x2, g2, b2, a2, block_cap_bytes=16 * 1024))
    ref2 = graph_norm_ref(x2, g2, b2, a2)
    assert out2.shape == (B2, N2, F2)
    assert jnp.allclose(out2, ref2, atol=1e-4, rtol=1e-4), "mismatch (streamed path)"

    print("KERNEL_OK")
</pallas_src>

<mosaic_0001>
module attributes {stable_mosaic.version = 11 : i64} {
  func.func @_graphnorm_fused_kernel(%arg0: i32, %arg1: i32, %arg2: memref<1x4x128xf32, #tpu.memory_space<vmem>>, %arg3: memref<3x128xf32, #tpu.memory_space<vmem>>, %arg4: memref<1x4x128xf32, #tpu.memory_space<vmem>>) attributes {dimension_semantics = [#tpu.dimension_semantics<parallel>, #tpu.dimension_semantics<parallel>], iteration_bounds = array<i64: 1, 2>, scalar_prefetch = 0 : i64, scratch_operands = 0 : i64, tpu.core_type = #tpu.core_type<tc>, window_params = [{transform_indices = @transform_0, window_bounds = array<i64: 1, 4, 128>}, {transform_indices = @transform_1, window_bounds = array<i64: 3, 128>}, {transform_indices = @transform_2, window_bounds = array<i64: 1, 4, 128>}]} {
    %c0 = arith.constant 0 : index
    %c0_0 = arith.constant 0 : index
    %c0_1 = arith.constant 0 : index
    %0 = vector.load %arg2[%c0, %c0_0, %c0_1] : memref<1x4x128xf32, #tpu.memory_space<vmem>>, vector<1x4x128xf32>
    %c0_2 = arith.constant 0 : index
    %c0_3 = arith.constant 0 : index
    %1 = vector.load %arg3[%c0_2, %c0_3] : memref<3x128xf32, #tpu.memory_space<vmem>>, vector<3x128xf32>
    %2 = vector.extract_strided_slice %1 {offsets = [0, 0], sizes = [1, 128], strides = [1, 1]} : vector<3x128xf32> to vector<1x128xf32>
    %3 = vector.shape_cast %2 : vector<1x128xf32> to vector<1x1x128xf32>
    %4 = vector.extract_strided_slice %1 {offsets = [1, 0], sizes = [1, 128], strides = [1, 1]} : vector<3x128xf32> to vector<1x128xf32>
    %5 = vector.shape_cast %4 : vector<1x128xf32> to vector<1x1x128xf32>
    %6 = vector.extract_strided_slice %1 {offsets = [2, 0], sizes = [1, 128], strides = [1, 1]} : vector<3x128xf32> to vector<1x128xf32>
    %7 = vector.shape_cast %6 : vector<1x128xf32> to vector<1x1x128xf32>
    %cst = arith.constant dense<0.000000e+00> : vector<1x128xf32>
    %8 = vector.multi_reduction <add>, %0, %cst [1] : vector<1x4x128xf32> to vector<1x128xf32>
    %9 = vector.shape_cast %8 : vector<1x128xf32> to vector<1x1x128xf32>
    %c32_i32 = arith.constant 32 : i32
    %10 = tpu.dynamic_rotate %9 by %c32_i32 dim 2 : vector<1x1x128xf32>, i32 -> vector<1x1x128xf32>
    %11 = arith.addf %9, %10 : vector<1x1x128xf32>
    %c64_i32 = arith.constant 64 : i32
    %12 = tpu.dynamic_rotate %11 by %c64_i32 dim 2 : vector<1x1x128xf32>, i32 -> vector<1x1x128xf32>
    %13 = arith.addf %11, %12 : vector<1x1x128xf32>
    %cst_4 = arith.constant 6.250000e-02 : f32
    %14 = vector.broadcast %cst_4 : f32 to vector<1x1x128xf32>
    %15 = arith.mulf %13, %14 : vector<1x1x128xf32>
    %16 = vector.broadcast %15 : vector<1x1x128xf32> to vector<1x4x128xf32>
    %17 = arith.subf %0, %16 : vector<1x4x128xf32>
    %18 = arith.mulf %17, %17 : vector<1x4x128xf32>
    %cst_5 = arith.constant dense<0.000000e+00> : vector<1x128xf32>
    %19 = vector.multi_reduction <add>, %18, %cst_5 [1] : vector<1x4x128xf32> to vector<1x128xf32>
    %20 = vector.shape_cast %19 : vector<1x128xf32> to vector<1x1x128xf32>
    %c32_i32_6 = arith.constant 32 : i32
    %21 = tpu.dynamic_rotate %20 by %c32_i32_6 dim 2 : vector<1x1x128xf32>, i32 -> vector<1x1x128xf32>
    %22 = arith.addf %20, %21 : vector<1x1x128xf32>
    %c64_i32_7 = arith.constant 64 : i32
    %23 = tpu.dynamic_rotate %22 by %c64_i32_7 dim 2 : vector<1x1x128xf32>, i32 -> vector<1x1x128xf32>
    %24 = arith.addf %22, %23 : vector<1x1x128xf32>
    %cst_8 = arith.constant 6.250000e-02 : f32
    %25 = vector.broadcast %cst_8 : f32 to vector<1x1x128xf32>
    %26 = arith.mulf %24, %25 : vector<1x1x128xf32>
    %cst_9 = arith.constant 0.000000e+00 : f32
    %27 = vector.broadcast %cst_9 : f32 to vector<1x1x128xf32>
    %28 = arith.maximumf %26, %27 : vector<1x1x128xf32>
    %29 = math.rsqrt %28 : vector<1x1x128xf32>
    %30 = arith.mulf %3, %29 : vector<1x1x128xf32>
    %cst_10 = arith.constant 1.000000e+00 : f32
    %31 = vector.broadcast %cst_10 : f32 to vector<1x1x128xf32>
    %32 = arith.subf %31, %7 : vector<1x1x128xf32>
    %33 = arith.mulf %15, %32 : vector<1x1x128xf32>
    %34 = arith.mulf %30, %33 : vector<1x1x128xf32>
    %35 = arith.addf %5, %34 : vector<1x1x128xf32>
    %36 = vector.broadcast %30 : vector<1x1x128xf32> to vector<1x4x128xf32>
    %37 = arith.mulf %17, %36 : vector<1x4x128xf32>
    %38 = vector.broadcast %35 : vector<1x1x128xf32> to vector<1x4x128xf32>
    %39 = arith.addf %37, %38 : vector<1x4x128xf32>
    %c0_11 = arith.constant 0 : index
    %c0_12 = arith.constant 0 : index
    %c0_13 = arith.constant 0 : index
    %40 = vector.load %arg4[%c0_11, %c0_12, %c0_13] : memref<1x4x128xf32, #tpu.memory_space<vmem>>, vector<1x4x128xf32>
    tpu.vector_store %arg4[%c0_11, %c0_12, %c0_13], %39 {strides = array<i32>} : memref<1x4x128xf32, #tpu.memory_space<vmem>>, vector<1x4x128xf32>,
    return
  }
  func.func @transform_0(%arg0: i32, %arg1: i32) -> (i32, i32, i32) {
    %c0_i32 = arith.constant 0 : i32
    %c0_i32_0 = arith.constant 0 : i32
    return %arg1, %c0_i32, %arg0 : i32, i32, i32
  }
  func.func @transform_1(%arg0: i32, %arg1: i32) -> (i32, i32) {
    %c0_i32 = arith.constant 0 : i32
    %c0_i32_0 = arith.constant 0 : i32
    return %c0_i32, %arg0 : i32, i32
  }
  func.func @transform_2(%arg0: i32, %arg1: i32) -> (i32, i32, i32) {
    %c0_i32 = arith.constant 0 : i32
    %c0_i32_0 = arith.constant 0 : i32
    return %arg1, %c0_i32, %arg0 : i32, i32, i32
  }
}

</mosaic_0001>

<bundles_post_ra>
// kernel: tpu_custom_call.1
= control target key start
LH: loop header
LB: loop body
LE: loop exit
PB: predicated region body
PF: predicated region fallthrough
CT: control target
= control target key end

     0   :  { %7 = vsyncpa [#allocation3], 0  ;;  %s783_s0 = inlined_call_operand.hbm [shape: f32[2,4,128], index: 0, kind: input, shape index: {}]   ;;  %s784_s1 = inlined_call_operand.hbm [shape: f32[3,128], index: 1, kind: input, shape index: {}]   ;;  %s785_s2 = inlined_call_operand.hbm [shape: f32[2,4,128], index: 2, kind: output, shape index: {}]  }
   0x1   :  { %9 = vsyncpa [#allocation3 + $0x1], 0 }
   0x2   :  { %10 = vsyncpa [#allocation6], 0 }
   0x3   :  { %11 = vsyncpa [#allocation4], 0 }
   0x4   :  { %13 = vsyncpa [#allocation4 + $0x1], 0  ;;  %s628_s9 = smov 0   ;;  %s630_s10 = smov 0  }
   0x5   :  { %s632_s11 = smov 0   ;;  %s634_s12 = smov 0  }
   0x6   :  { %s636_s13 = smov 0   ;;  %s638_s14 = smov 0  }
   0x7 LB: > { %s370_s15 = sadd.s32 4294967295, %s608_s14   ;;  %s371_s16 = sadd.s32 4294967294, %s608_s14   ;;  %s608_s14 = sphi %s638_s14, %s19_s14   ;;  %s604_s13 = sphi %s636_s13, %s797_s13   ;;  %s600_s12 = sphi %s634_s12, %s796_s12   ;;  %s596_s11 = sphi %s632_s11, %s795_s11   ;;  %s592_s10 = sphi %s630_s10, %s794_s10   ;;  %s588_s9 = sphi %s628_s9, %s793_s9  }
   0x8   : > { %p53_p0 = scmp.ne.s32.totalorder %s592_s10, %s588_s9  ;;  %p662_p1 = scmp.eq.s32.totalorder %s370_s15, 0 }
   0x9   : > { %p666_p2 = scmp.eq.s32.totalorder %s370_s15, 1  ;;  %p111_p3 = scmp.eq.s32.totalorder %s371_s16, 1 }
   0xa   : > { %p672_p4 = por %p662_p1, %p53_p0  ;;  %p372_p5 = scmp.ge.s32.totalorder %s608_s14, 1 }
   0xb   : > { %p677_p6 = por %p111_p3, %p53_p0  ;;  %p118_p7 = scmp.lt.s32.totalorder %s608_s14, 3 }
   0xc   : > { %s132_s23 = sshll.u32 %s784_s1, 4  ;;  %p374_p9 = scmp.ge.s32.totalorder %s608_s14, 2  ;;  %s133_s23 = int_to_ptr.hbm [resolvable:$true] %s132_s23 }
   0xd   : > { %p685_p8 = pnand %p372_p5, %p118_p7  ;;  %s610_s25 = smov [#allocation5]  }
   0xe   : > { %s134_s26 = sshll.u32 %s610_s25, 4  ;;  %s28_s27 = sadd.s32 1, %s604_s13  ;;  %s135_s26 = int_to_ptr.vmem [resolvable:$true] %s134_s26 }
   0xf   : > { %p393_p10 = pneg %p685_p8  ;;  %p29_p12 = scmp.ge.s32.totalorder %s28_s27, 2 }
  0x10   : > { %s40_s28 = sadd.s32 1, %s596_s11  ;;  %p47_p13 = scmp.ne.s32.totalorder %s596_s11, %s592_s10 }
  0x11   : > { %p394_p11 = pnand %p393_p10, %p662_p1  ;;  %p48_p0 = scmp.eq.s32.totalorder %s608_s14, 0 }
  0x12   : > { %s799_s27 = smov (%p29_p12, %s28_s27), 0  ;;  %p707_p5 = por %p666_p2, %p47_p13 }
  0x13   : > { %396 = dma.hbm_to_vmem [thread:$0]  (!%p394_p11), %s133_s23, 64, %s135_s26, [#allocation6]  }
  0x14   : > { %p701_p3 = por %p48_p0, %p47_p13  ;;  %s35_s3 = ssub.s32 %s604_s13, %s799_s27 }
  0x15   : > { %p406_p7 = scmp.lt.s32.totalorder %s608_s14, 2  ;;  %p38_p10 = scmp.eq.s32.totalorder %s35_s3, 0 }
  0x16   : > { %s145_s4 = sand.u32 1, %s596_s11   ;;  %s376_s7 = sshll.u32 %s604_s13, 2 }
  0x17   : > { %s375_s5 = sshll.u32 %s145_s4, 2  ;;  %s154_s16 = scalar_lea.hbm %s783_s0, %s376_s7 }
  0x18   : > { %s716_s6 = scalar_select %p38_p10, %s596_s11, %s40_s28  }
  0x19   : > { %s149_s21 = scalar_lea.vmem [#allocation2], %s375_s5  ;;  %s156_s18 = sshll.u32 %s154_s16, 4  ;;  %s157_s18 = int_to_ptr.hbm [resolvable:$true] %s156_s18 }
  0x1a   : > { %s158_s22 = sshll.u32 %s149_s21, 4  ;;  %p398_p2 = pnand %p406_p7, %p701_p3  ;;  %s159_s22 = int_to_ptr.vmem [resolvable:$true] %s158_s22 }
  0x1b   : > { %s146_s23 = scalar_lea.sflag [#allocation3], %s145_s4  ;;  %167 = sbr.rel (%p685_p8) target bundleno = 575 (0x23f), region = 28 }
  0x1c   : > { %400 = dma.hbm_to_vmem [thread:$0]  (!%p398_p2), %s157_s18, 64, %s159_s22, %s146_s23  }
  0x1d   : > { %s727_s25 = sand.u32 (!%p685_p8), 1, %s592_s10  }
  0x1e   : > { %s378_s26 = sshll.u32 (!%p685_p8), %s727_s25, 2  ;;  %s170_s28 = scalar_lea.sflag (!%p685_p8), [#allocation3], %s727_s25 }
  0x1f   : > { %s173_s3 = scalar_lea.vmem (!%p685_p8), [#allocation2], %s378_s26 }
  0x20   : > { %575 = dma.done.wait (%p672_p4), %s170_s28, 64  }
  0x21   : > { %577 = vsyncadd (%p672_p4), %s170_s28, 4294967232 }
  0x22   : > { %579 = dma.done.wait (%p662_p1), [#allocation6], 64  }
  0x23   : > { %581 = vsyncadd (%p662_p1), [#allocation6], 4294967232  ;;  %vm202_vm0 = vcmask 1043456   ;;  %v200_v0 = vld [vmem:[%s173_s3] sm:$0xf]  ;;  %s611_s24 = smov 32  }
  0x24   : > { %v203_v1 = vsel %vm202_vm0, %v200_v0, 0.0  ;;  %s612_s19 = smov 64   ;;  %v201_v30 = vld [vmem:[#allocation5] sm:$0x7]  ;;  %s382_s17 = sshll.u32 %s600_s12, 2 }
  0x25   : > { %v204_v2 = vrot.slane %v203_v1, 4  ;;  %v246_v33 = vsub.f32 1.0, %v201_v30  ;;  %s273_s5 = scalar_lea.hbm %s785_s2, %s382_s17  ;;  %s199_s7 = scalar_lea.vmem [#allocation7], %s378_s26 }
  0x26   : > { %s275_s8 = sshll.u32 %s199_s7, 4  ;;  %s277_s15 = sshll.u32 %s273_s5, 4  ;;  %s276_s8 = int_to_ptr.vmem [resolvable:$true] %s275_s8  ;;  %s278_s15 = int_to_ptr.hbm [resolvable:$true] %s277_s15 }
  0x27   : > { %v205_v3 = vadd.f32 %v204_v2, %v203_v1  ;;  %v248_v36 = vrot.slane %v246_v33, 2  ;;  %s262_s12 = scalar_lea.sflag [#allocation4], %s727_s25  ;;  %s536_s16 = sshra.s32 %s278_s15, 4  ;;  %s537_s16 = int_to_ptr.hbm [resolvable:$true] %s536_s16 }
  0x28   : > { %s538_s21 = scalar_lea.hbm %s537_s16, 4  ;;  %s542_s23 = scalar_lea.hbm %s785_s2, 8 }
  0x29   : > { %v206_v4 = vrot.slane %v205_v3, 2  ;;  %p539_p1 = scmp.ne.s32.totalorder %s537_s16, %s538_s21  ;;  %p543_p11 = scmp.lt.s32.totalorder %s537_s16, %s785_s2 }
  0x2a   : > { %p544_p12 = scmp.lt.s32.totalorder %s542_s23, %s538_s21 }
  0x2b   : > { %v207_v5 = vadd.f32 %v206_v4, %v205_v3  ;;  %p540_p4 = pnand %p539_p1, %p707_p5 }
  0x2c   : > { %p545_p13 = por %p544_p12, %p543_p11 }
  0x2d   : > { %v208_v6 = vrot.slane %v207_v5, 1  ;;  %p541_p8 = pneg %p540_p4 }
  0x2f   : > { %v209_v7 = vadd.f32 %v208_v6, %v207_v5  ;;  %p546_p0 = pnand %p545_p13, %p541_p8 }
  0x31   : > { %210 = vrot.lane.b32.xlu0 %v209_v7, %s611_s24 }
  0xa3   : > { %v211_v8 = vpop.permute.xlu0 %210 }
  0xa4   : > { %v212_v9 = vadd.f32 %v211_v8, %v209_v7 }
  0xa6   : > { %213 = vrot.lane.b32.xlu0 %v212_v9, %s612_s19 }
 0x118   : > { %v214_v10 = vpop.permute.xlu0 %213 }
 0x119   : > { %v215_v11 = vadd.f32 %v214_v10, %v212_v9 }
 0x11b   : > { %v216_v12 = vmul.f32 0.0625, %v215_v11 }
 0x11d   : > { %v217_v13 = vperm.slane %v216_v12, 0  ;;  %v250_v39 = vmul.f32 %v248_v36, %v216_v12 }
 0x11f   : > { %v218_v14 = vsub.f32 %v200_v0, %v217_v13 }
 0x121   : > { %v219_v15 = vmul.f32 %v218_v14, %v218_v14 }
 0x123   : > { %v220_v16 = vsel %vm202_vm0, %v219_v15, 0.0 }
 0x124   : > { %v221_v17 = vrot.slane %v220_v16, 4 }
 0x126   : > { %v222_v18 = vadd.f32 %v221_v17, %v220_v16 }
 0x128   : > { %v223_v19 = vrot.slane %v222_v18, 2 }
 0x12a   : > { %v224_v20 = vadd.f32 %v223_v19, %v222_v18 }
 0x12c   : > { %v225_v21 = vrot.slane %v224_v20, 1 }
 0x12e   : > { %v226_v22 = vadd.f32 %v225_v21, %v224_v20 }
 0x130   : > { %227 = vrot.lane.b32.xlu1 %v226_v22, %s611_s24 }
 0x1a2   : > { %v228_v23 = vpop.permute.xlu1 %227 }
 0x1a3   : > { %v229_v24 = vadd.f32 %v228_v23, %v226_v22 }
 0x1a5   : > { %230 = vrot.lane.b32.xlu1 %v229_v24, %s612_s19 }
 0x217   : > { %v231_v25 = vpop.permute.xlu1 %230 }
 0x218   : > { %v232_v26 = vadd.f32 %v231_v25, %v229_v24 }
 0x21a   : > { %v233_v27 = vmul.f32 0.0625, %v232_v26 }
 0x21c   : > { %v234_v28 = vmax.f32 %v233_v27, 0.0 }
 0x21e   : > { %460 = vrsqrt.f32 %v234_v28  ;;  %vm241_vm2 = vweird.f32 %v234_v28 }
 0x224   : > { %v461_v29 = vpop.eup %460 }
 0x225   : > { %v236_v31 = vmul.f32 %v461_v29, %v234_v28  ;;  %vm242_vm1 = vweird.f32 %v461_v29 }
 0x226   : > { %vm243_vm3 = vmor %vm241_vm2, %vm242_vm1 }
 0x227   : > { %v237_v32 = vmul.f32 %v461_v29, %v236_v31 }
 0x229   : > { %v238_v34 = vmul.f32 0.5, %v237_v32 }
 0x22b   : > { %v239_v35 = vsub.f32 1.5, %v238_v34 }
 0x22d   : > { %v240_v37 = vmul.f32 %v461_v29, %v239_v35 }
 0x22f   : > { %v244_v38 = vsel %vm243_vm3, %v461_v29, %v240_v37 }
 0x230   : > { %v245_v40 = vmul.f32 %v244_v38, %v201_v30 }
 0x232   : > { %v251_v41 = vmul.f32 %v250_v39, %v245_v40  ;;  %v256_v43 = vperm.slane %v245_v40, 0 }
 0x234   : > { %v253_v42 = vrot.slane %v251_v41, 7  ;;  %v257_v45 = vmul.f32 %v256_v43, %v218_v14 }
 0x236   : > { %v255_v44 = vadd.f32 %v253_v42, %v201_v30 }
 0x238   : > { %v258_v46 = vperm.slane %v255_v44, 1 }
 0x23a   : > { %v259_v47 = vadd.f32 %v258_v46, %v257_v45 }
 0x23c   : > { %260 = vst [vmem:[%s199_s7] sm:$0xf] %v259_v47 }
 0x23d   : > { %549 = shalt.err (!%p546_p0)
}
 0x23e   : > { %391 = dma.vmem_to_hbm [thread:$0]  (%p707_p5), %s276_s8, 64, %s278_s15, %s262_s12  }
 0x23f PF: > { %s289_s25 = sand.u32 1, %s588_s9   ;;  %p402_p3 = pnand %p374_p9, %p677_p6 }
 0x240   : > { %s290_s3 = scalar_lea.sflag [#allocation4], %s289_s25 }
 0x241   : > { %p403_p7 = pneg %p402_p3 }
 0x243   : > { %583 = dma.done.wait (%p403_p7), %s290_s3, 64  }
 0x244   : > { %585 = vsyncadd (%p403_p7), %s290_s3, 4294967232  ;;  %s19_s14 = sadd.s32 1, %s608_s14   ;;  %s793_s9 = smov %s592_s10 }
 0x245   : > { %p16_p10 = scmp.ge.s32.totalorder %s19_s14, 4   ;;  %s794_s10 = smov %s596_s11 }
 0x246   : > { %s795_s11 = smov %s716_s6  ;;  %s796_s12 = smov %s604_s13 }
 0x247   : > { %s797_s13 = smov %s799_s27  ;;  %18 = sbr.rel (!%p16_p10) target bundleno = 7 (0x7), region = 78 }
 0x24c   :  { %296 = vsyncpa [#allocation3], 1 }
 0x24d   :  { %298 = vsyncpa [#allocation3 + $0x1], 1 }
 0x24e   :  { %299 = vsyncpa [#allocation6], 1 }
 0x24f   :  { %300 = vsyncpa [#allocation4], 1 }
 0x250   :  { %302 = vsyncpa [#allocation4 + $0x1], 1 }

</bundles_post_ra>
